<compile_context>
chip_gen: v7x
topology: tpu7x:2x2x1
jax: 0.10.0
libtpu: 0.0.40
codegen_flags: <defaults>
</compile_context>

<pallas_src>
"""
Pallas TPU implementation of the spiking ResNet `_BasicBlock` (inference):

    x -> conv1(3x3,s1,p1,no bias) -> bn1 -> LIF -> conv2(3x3,s1,p1) -> bn2
      -> (+ identity) -> LIF -> spikes

Semantics reproduced:
  * conv: 3x3 / stride 1 / padding 1 / no bias (downsample=None => cin == cout).
  * BatchNorm2d (running-stats inference) folded away: per-channel scale into
    the conv weights, per-channel bias into the LIF threshold.
  * LIFNode (spikingjelly defaults tau=2, v_th=1, v_reset=0, decay_input=True),
    single step from rest: v = x / tau, spike = (v >= v_th).float().

Performance design (per review, v5e / v6e / v7x):
  * Lane-dense activations: (N, H, W*C) with W*C = 128 on the lane axis, so all
    MXU results, VPU ops and output stores are 128-lane dense.  NCHW<->packed
    conversion happens only at the network boundary (packed entry point is the
    fast path for chaining blocks).
  * Batched grid: each grid step processes Nb images stacked along the sublane
    axis (Nb*H ~ 256 rows), amortising the ~0.35 us per-step pipeline overhead
    and filling the MXU M dimension (was 16 rows / step before).
  * Each 3x3 conv = three accumulated (rows, L) @ (L, L) bf16 MXU matmuls, one
    per H tap; the W/channel taps are folded into each banded (L, L) weight.
    H taps use pltpu.roll (XLU sublane rotate) + per-image boundary masks, so
    no 3x-wide LHS operand is materialised and stacked images never leak rows.
  * Merged (2, L) threshold input (one DMA instead of two); spikes emitted as
    bf16 (exact 0/1) to halve HBM writeback.
"""

import jax
import jax.numpy as jnp
import numpy as np
from jax.experimental import pallas as pl
from jax.experimental.pallas import tpu as pltpu

TAU = 2.0    # LIFNode default tau
V_TH = 1.0   # LIFNode default v_threshold (v_reset = 0, decay_input = True)


# --------------------------------------------------------------------------- #
# Kernel: one batched tile (Nb images) per grid step
# --------------------------------------------------------------------------- #
def _basic_block_kernel(x_ref, w1_ref, w2_ref, thr_ref, o_ref):
    """x_ref  : (Nb, H, L_in)      f32/bf16  packed input, lanes = (w, c)
       w1_ref : (3, L_in,  L_out)  bf16      conv1 banded taps, BN1 scale folded
       w2_ref : (3, L_out, L_out)  bf16      conv2 banded taps, BN2 scale folded
       thr_ref: (2, L_out)         f32       LIF thresholds TAU*V_TH - bn_bias
       o_ref  : (Nb, H, L_out)     bf16      output spikes (exact 0/1)
    """
    nb, hh, lane_in = x_ref.shape
    rows = nb * hh

    # (Nb, H, L) -> (Nb*H, L): collapsing the leading dims is layout-free when
    # H is a multiple of the 8-row sublane tile (asserted in the wrapper).
    x_f32 = x_ref[...].reshape(rows, lane_in).astype(jnp.float32)

    # Per-image row index (images are stacked on the sublane axis) used to mask
    # the +-1 row taps at per-image H boundaries (no row leakage between images).
    row_ids = jax.lax.broadcasted_iota(jnp.int32, (rows, 1), 0)
    if (hh & (hh - 1)) == 0:
        row_in_img = row_ids & (hh - 1)
    else:
        row_in_img = row_ids % hh
    not_first = row_in_img != 0          # a valid h-1 source row exists
    not_last = row_in_img != hh - 1      # a valid h+1 source row exists

    def conv3x3(a_f32, w_ref):
        # H taps via sublane rotations (XLU slot) + boundary masks; the W and
        # channel taps are folded into each banded (L, L) weight slice.  Rolls
        # stay in native-32-bit f32; operands are cast to bf16 only at the MXU
        # input.  Three K=L matmuls accumulate into a single f32 value (no
        # 3x-wide LHS operand is ever materialised).
        up = jnp.where(not_first, pltpu.roll(a_f32, 1, axis=0), 0.0)
        down = jnp.where(not_last, pltpu.roll(a_f32, rows - 1, axis=0), 0.0)
        acc = jnp.dot(up.astype(jnp.bfloat16), w_ref[0],
                      preferred_element_type=jnp.float32)
        acc = acc + jnp.dot(a_f32.astype(jnp.bfloat16), w_ref[1],
                            preferred_element_type=jnp.float32)
        acc = acc + jnp.dot(down.astype(jnp.bfloat16), w_ref[2],
                            preferred_element_type=jnp.float32)
        return acc

    thr1 = thr_ref[0:1, :]               # TAU*V_TH - bn1_bias
    thr2 = thr_ref[1:2, :]               # TAU*V_TH - bn2_bias

    # conv1 (+ folded BN1 scale) -> LIF1
    acc1 = conv3x3(x_f32, w1_ref)
    spk1 = jnp.where(acc1 >= thr1, 1.0, 0.0)          # exact {0,1}
    # conv2 (+ folded BN2 scale) -> + identity -> LIF2
    acc2 = conv3x3(spk1, w2_ref)
    out = jnp.where(acc2 + x_f32 >= thr2, 1.0, 0.0)
    o_ref[...] = out.reshape(o_ref.shape).astype(o_ref.dtype)


# --------------------------------------------------------------------------- #
# Host-side parameter prep: 3x3 conv -> 3 banded (W*Cin, W*Cout) tap matrices
# --------------------------------------------------------------------------- #
def _band_tap_weights(w_hwio, scale, width):
    """Fold BN scale into the HWIO weight and build, for each H tap kh, the
    banded (W*Cin, W*Cout) matrix that performs the W and channel taps with
    lanes packed as (w, c).  y[h, wo] = sum_kh  x[h+kh-1] @ band[kh]."""
    _, _, cin, cout = w_hwio.shape
    wk = (np.asarray(w_hwio, np.float32)
          * np.asarray(scale, np.float32)[None, None, None, :])
    bands = np.zeros((3, width * cin, width * cout), np.float32)
    for kh in range(3):
        for kw in range(3):
            for wo in range(width):
                wi = wo + kw - 1                       # implicit W zero-padding
                if 0 <= wi < width:
                    bands[kh, wi * cin:(wi + 1) * cin,
                          wo * cout:(wo + 1) * cout] = wk[kh, kw]
    return jnp.asarray(bands, dtype=jnp.bfloat16)


def prepare_block_params(w1_hwio, w2_hwio, bn1, bn2, width):
    """BN scale -> conv weights (bf16 banded taps); BN bias -> LIF threshold:
    (conv*s + b)/TAU >= V_TH  <=>  conv_scaled >= TAU*V_TH - b."""
    s1, b1 = bn1
    s2, b2 = bn2
    w1_band = _band_tap_weights(w1_hwio, s1, width)    # (3, W*Cin,  W*Cout)
    w2_band = _band_tap_weights(w2_hwio, s2, width)    # (3, W*Cout, W*Cout)
    thr = jnp.stack(
        [TAU * V_TH - jnp.tile(jnp.asarray(b1, jnp.float32), width),
         TAU * V_TH - jnp.tile(jnp.asarray(b2, jnp.float32), width)],
        axis=0).astype(jnp.float32)                    # (2, W*Cout)
    return w1_band, w2_band, thr
    # TODO(synk): for realistic widths (W*C >= 1024) the banded weights grow as
    # 3*(W*C)^2 bf16 and exceed v7x's VMEM; switch to the 9-tap channel-matmul
    # form ((H*W, C) @ (C, C) per tap) and set vmem_limit_bytes accordingly.


# --------------------------------------------------------------------------- #
# Packed fast path: (N, H, W*C) in -> (N, H, W*C) bf16 spikes out
# --------------------------------------------------------------------------- #
def basic_block_forward_packed(x_pack, w1_band, w2_band, thr, *, rows_target=256):
    n, hh, lane_in = x_pack.shape
    lane_out = w1_band.shape[-1]
    assert lane_in == w1_band.shape[1]
    assert lane_in == lane_out, "downsample=None requires in_channel == out_channel"
    assert hh % 8 == 0, "H must be a multiple of 8 for layout-free row stacking"

    # Batch Nb images per grid step so Nb*H ~ rows_target (fills MXU M, amortises
    # per-step pipeline overhead).  Ragged batches are zero-padded and sliced off.
    nb = min(n, max(1, rows_target // hh))
    n_blocks = pl.cdiv(n, nb)
    n_pad = n_blocks * nb
    if n_pad != n:
        x_pack = jnp.pad(x_pack, ((0, n_pad - n), (0, 0), (0, 0)))

    out = pl.pallas_call(
        _basic_block_kernel,
        out_shape=jax.ShapeDtypeStruct((n_pad, hh, lane_out), jnp.bfloat16),
        grid_spec=pltpu.PrefetchScalarGridSpec(
            num_scalar_prefetch=0,
            grid=(n_blocks,),
            in_specs=[
                pl.BlockSpec((nb, hh, lane_in), lambda i: (i, 0, 0)),
                pl.BlockSpec((3, lane_in, lane_out), lambda i: (0, 0, 0)),
                pl.BlockSpec((3, lane_out, lane_out), lambda i: (0, 0, 0)),
                pl.BlockSpec((2, lane_out), lambda i: (0, 0)),
            ],
            out_specs=pl.BlockSpec((nb, hh, lane_out), lambda i: (i, 0, 0)),
        ),
        compiler_params=pltpu.CompilerParams(
            dimension_semantics=("parallel",)),
    )(x_pack, w1_band, w2_band, thr)
    return out[:n] if n_pad != n else out


# --------------------------------------------------------------------------- #
# NCHW boundary wrapper (PyTorch-compatible interface)
# --------------------------------------------------------------------------- #
def basic_block_forward(x_nchw, w1_hwio, w2_hwio, bn1, bn2):
    """x_nchw: (N, C, H, W) float32.  Returns (N, C, H, W) float32 spikes.
    When chaining blocks, call basic_block_forward_packed directly and keep the
    (N, H, W*C) packing end-to-end (layout conversion only at network edges)."""
    n, c, hh, ww = x_nchw.shape
    cin, cout = w1_hwio.shape[2], w1_hwio.shape[3]
    assert cin == c and cout == c, "downsample=None requires in_channel == out_channel"
    lane = ww * c

    x_pack = jnp.transpose(x_nchw, (0, 2, 3, 1)).reshape(n, hh, lane)
    x_pack = x_pack.astype(jnp.float32)
    w1_band, w2_band, thr = prepare_block_params(w1_hwio, w2_hwio, bn1, bn2, ww)

    out_pack = basic_block_forward_packed(x_pack, w1_band, w2_band, thr)
    out_nhwc = out_pack.astype(jnp.float32).reshape(n, hh, ww, c)
    return jnp.transpose(out_nhwc, (0, 3, 1, 2))


# --------------------------------------------------------------------------- #
# Pure-JAX reference (same BN-fold / bf16 numerics, independent XLA conv path)
# --------------------------------------------------------------------------- #
def _reference(x_nchw, w1_hwio, w2_hwio, bn1, bn2):
    s1, b1 = bn1
    s2, b2 = bn2
    x = jnp.transpose(x_nchw, (0, 2, 3, 1)).astype(jnp.float32)   # NHWC
    dn = ('NHWC', 'HWIO', 'NHWC')
    w1f = (w1_hwio * s1).astype(jnp.bfloat16)
    w2f = (w2_hwio * s2).astype(jnp.bfloat16)
    y1 = jax.lax.conv_general_dilated(x.astype(jnp.bfloat16), w1f, (1, 1), 'SAME',
                                      dimension_numbers=dn,
                                      preferred_element_type=jnp.float32)
    spk1 = (y1 >= TAU * V_TH - b1).astype(jnp.float32)
    y2 = jax.lax.conv_general_dilated(spk1.astype(jnp.bfloat16), w2f, (1, 1), 'SAME',
                                      dimension_numbers=dn,
                                      preferred_element_type=jnp.float32)
    out = (y2 + x >= TAU * V_TH - b2).astype(jnp.float32)
    return jnp.transpose(out, (0, 3, 1, 2))


# --------------------------------------------------------------------------- #
# Deterministic synthetic parameters (shapes match the PyTorch module)
# --------------------------------------------------------------------------- #
def _init_params(key, cin, cout):
    ks = jax.random.split(key, 10)
    w1 = jax.random.normal(ks[0], (3, 3, cin, cout), jnp.float32) / jnp.sqrt(9.0 * cin)
    w2 = jax.random.normal(ks[1], (3, 3, cout, cout), jnp.float32) / jnp.sqrt(9.0 * cout)

    def folded_bn(kg, kb, km, kv):
        gamma = jax.random.uniform(kg, (cout,), jnp.float32, 0.5, 1.5)
        beta = 0.1 * jax.random.normal(kb, (cout,), jnp.float32)
        mean = 0.1 * jax.random.normal(km, (cout,), jnp.float32)
        var = jax.random.uniform(kv, (cout,), jnp.float32, 0.5, 1.5)
        scale = gamma / jnp.sqrt(var + 1e-5)
        bias = beta - mean * scale
        return scale, bias

    bn1 = folded_bn(ks[2], ks[3], ks[4], ks[5])
    bn2 = folded_bn(ks[6], ks[7], ks[8], ks[9])
    return w1, w2, bn1, bn2


if __name__ == "__main__":
    # Small shapes consistent with the module (stride=1, downsample=None =>
    # in_channel == out_channel).  C=8, W=16 makes W*C = 128 (lane-dense).
    N, C, H, W = 2, 8, 16, 16
    key = jax.random.PRNGKey(0)
    kx, kp = jax.random.split(key)
    x = 2.0 * jax.random.normal(kx, (N, C, H, W), jnp.float32)    # NCHW input
    w1, w2, bn1, bn2 = _init_params(kp, C, C)

    out = jax.block_until_ready(basic_block_forward(x, w1, w2, bn1, bn2))
    ref = jax.block_until_ready(_reference(x, w1, w2, bn1, bn2))

    assert out.shape == (N, C, H, W) and out.dtype == jnp.float32
    # LIF thresholding is a hard step; allow a vanishing spike-mismatch fraction
    # from bf16 accumulation-order differences at the threshold boundary.
    mismatch = float(jnp.mean((jnp.abs(out - ref) > 0.5).astype(jnp.float32)))
    assert mismatch <= 5e-3, f"spike mismatch fraction too high: {mismatch}"

    print("KERNEL_OK")
</pallas_src>

<mosaic_0001>
module attributes {stable_mosaic.version = 11 : i64} {
  func.func @_basic_block_kernel(%arg0: i32, %arg1: memref<2x16x128xf32, #tpu.memory_space<vmem>>, %arg2: memref<3x128x128xbf16, #tpu.memory_space<vmem>>, %arg3: memref<3x128x128xbf16, #tpu.memory_space<vmem>>, %arg4: memref<2x128xf32, #tpu.memory_space<vmem>>, %arg5: memref<2x16x128xbf16, #tpu.memory_space<vmem>>) attributes {dimension_semantics = [#tpu.dimension_semantics<parallel>], iteration_bounds = array<i64: 1>, scalar_prefetch = 0 : i64, scratch_operands = 0 : i64, tpu.core_type = #tpu.core_type<tc>, window_params = [{transform_indices = @transform_0, window_bounds = array<i64: 2, 16, 128>}, {pipeline_mode = #tpu.pipeline_mode<synchronous>, transform_indices = @transform_1, window_bounds = array<i64: 3, 128, 128>}, {pipeline_mode = #tpu.pipeline_mode<synchronous>, transform_indices = @transform_2, window_bounds = array<i64: 3, 128, 128>}, {pipeline_mode = #tpu.pipeline_mode<synchronous>, transform_indices = @transform_3, window_bounds = array<i64: 2, 128>}, {transform_indices = @transform_4, window_bounds = array<i64: 2, 16, 128>}]} {
    %c0 = arith.constant 0 : index
    %c0_0 = arith.constant 0 : index
    %c0_1 = arith.constant 0 : index
    %0 = vector.load %arg1[%c0, %c0_0, %c0_1] : memref<2x16x128xf32, #tpu.memory_space<vmem>>, vector<2x16x128xf32>
    %1 = vector.shape_cast %0 : vector<2x16x128xf32> to vector<32x128xf32>
    %2 = tpu.iota {dimensions = array<i32: 0>} : vector<32x1xi32>
    %c15_i32 = arith.constant 15 : i32
    %3 = vector.broadcast %c15_i32 : i32 to vector<32x1xi32>
    %4 = arith.andi %2, %3 : vector<32x1xi32>
    %c0_i32 = arith.constant 0 : i32
    %5 = vector.broadcast %c0_i32 : i32 to vector<32x1xi32>
    %6 = arith.cmpi ne, %4, %5 : vector<32x1xi32>
    %c15_i32_2 = arith.constant 15 : i32
    %7 = vector.broadcast %c15_i32_2 : i32 to vector<32x1xi32>
    %8 = arith.cmpi ne, %4, %7 : vector<32x1xi32>
    %c0_3 = arith.constant 0 : index
    %c0_4 = arith.constant 0 : index
    %9 = vector.load %arg4[%c0_3, %c0_4] : memref<2x128xf32, #tpu.memory_space<vmem>>, vector<1x128xf32>
    %c1 = arith.constant 1 : index
    %c0_5 = arith.constant 0 : index
    %10 = vector.load %arg4[%c1, %c0_5] : memref<2x128xf32, #tpu.memory_space<vmem>>, vector<1x128xf32>
    %c1_i32 = arith.constant 1 : i32
    %11 = tpu.dynamic_rotate %1 by %c1_i32 dim 0 : vector<32x128xf32>, i32 -> vector<32x128xf32>
    %cst = arith.constant 0.000000e+00 : f32
    %12 = vector.shape_cast %6 : vector<32x1xi1> to vector<32x1xi1>
    %13 = vector.broadcast %12 : vector<32x1xi1> to vector<32x128xi1>
    %14 = vector.broadcast %cst : f32 to vector<32x128xf32>
    %15 = arith.select %13, %11, %14 : vector<32x128xi1>, vector<32x128xf32>
    %c31_i32 = arith.constant 31 : i32
    %16 = tpu.dynamic_rotate %1 by %c31_i32 dim 0 : vector<32x128xf32>, i32 -> vector<32x128xf32>
    %cst_6 = arith.constant 0.000000e+00 : f32
    %17 = vector.shape_cast %8 : vector<32x1xi1> to vector<32x1xi1>
    %18 = vector.broadcast %17 : vector<32x1xi1> to vector<32x128xi1>
    %19 = vector.broadcast %cst_6 : f32 to vector<32x128xf32>
    %20 = arith.select %18, %16, %19 : vector<32x128xi1>, vector<32x128xf32>
    %21 = arith.truncf %15 : vector<32x128xf32> to vector<32x128xbf16>
    %c0_7 = arith.constant 0 : index
    %c0_8 = arith.constant 0 : index
    %c0_9 = arith.constant 0 : index
    %22 = vector.load %arg2[%c0_7, %c0_8, %c0_9] : memref<3x128x128xbf16, #tpu.memory_space<vmem>>, vector<1x128x128xbf16>
    %23 = vector.shape_cast %22 : vector<1x128x128xbf16> to vector<128x128xbf16>
    %cst_10 = arith.constant dense<0.000000e+00> : vector<32x128xf32>
    %24 = tpu.matmul %21, %23, %cst_10 {dimension_numbers = #tpu.dot_dimension_numbers<[1], [0], [0], [1], [0, 0, 1, 1], [], []>} : vector<32x128xbf16>, vector<128x128xbf16>, vector<32x128xf32> -> vector<32x128xf32>
    %25 = arith.truncf %1 : vector<32x128xf32> to vector<32x128xbf16>
    %c1_11 = arith.constant 1 : index
    %c0_12 = arith.constant 0 : index
    %c0_13 = arith.constant 0 : index
    %26 = vector.load %arg2[%c1_11, %c0_12, %c0_13] : memref<3x128x128xbf16, #tpu.memory_space<vmem>>, vector<1x128x128xbf16>
    %27 = vector.shape_cast %26 : vector<1x128x128xbf16> to vector<128x128xbf16>
    %cst_14 = arith.constant dense<0.000000e+00> : vector<32x128xf32>
    %28 = tpu.matmul %25, %27, %cst_14 {dimension_numbers = #tpu.dot_dimension_numbers<[1], [0], [0], [1], [0, 0, 1, 1], [], []>} : vector<32x128xbf16>, vector<128x128xbf16>, vector<32x128xf32> -> vector<32x128xf32>
    %29 = arith.addf %24, %28 : vector<32x128xf32>
    %30 = arith.truncf %20 : vector<32x128xf32> to vector<32x128xbf16>
    %c2 = arith.constant 2 : index
    %c0_15 = arith.constant 0 : index
    %c0_16 = arith.constant 0 : index
    %31 = vector.load %arg2[%c2, %c0_15, %c0_16] : memref<3x128x128xbf16, #tpu.memory_space<vmem>>, vector<1x128x128xbf16>
    %32 = vector.shape_cast %31 : vector<1x128x128xbf16> to vector<128x128xbf16>
    %cst_17 = arith.constant dense<0.000000e+00> : vector<32x128xf32>
    %33 = tpu.matmul %30, %32, %cst_17 {dimension_numbers = #tpu.dot_dimension_numbers<[1], [0], [0], [1], [0, 0, 1, 1], [], []>} : vector<32x128xbf16>, vector<128x128xbf16>, vector<32x128xf32> -> vector<32x128xf32>
    %34 = arith.addf %29, %33 : vector<32x128xf32>
    %35 = vector.broadcast %9 : vector<1x128xf32> to vector<32x128xf32>
    %36 = arith.cmpf oge, %34, %35 : vector<32x128xf32>
    %cst_18 = arith.constant 1.000000e+00 : f32
    %cst_19 = arith.constant 0.000000e+00 : f32
    %37 = vector.broadcast %cst_18 : f32 to vector<32x128xf32>
    %38 = vector.broadcast %cst_19 : f32 to vector<32x128xf32>
    %39 = arith.select %36, %37, %38 : vector<32x128xi1>, vector<32x128xf32>
    %c1_i32_20 = arith.constant 1 : i32
    %40 = tpu.dynamic_rotate %39 by %c1_i32_20 dim 0 : vector<32x128xf32>, i32 -> vector<32x128xf32>
    %cst_21 = arith.constant 0.000000e+00 : f32
    %41 = vector.shape_cast %6 : vector<32x1xi1> to vector<32x1xi1>
    %42 = vector.broadcast %41 : vector<32x1xi1> to vector<32x128xi1>
    %43 = vector.broadcast %cst_21 : f32 to vector<32x128xf32>
    %44 = arith.select %42, %40, %43 : vector<32x128xi1>, vector<32x128xf32>
    %c31_i32_22 = arith.constant 31 : i32
    %45 = tpu.dynamic_rotate %39 by %c31_i32_22 dim 0 : vector<32x128xf32>, i32 -> vector<32x128xf32>
    %cst_23 = arith.constant 0.000000e+00 : f32
    %46 = vector.shape_cast %8 : vector<32x1xi1> to vector<32x1xi1>
    %47 = vector.broadcast %46 : vector<32x1xi1> to vector<32x128xi1>
    %48 = vector.broadcast %cst_23 : f32 to vector<32x128xf32>
    %49 = arith.select %47, %45, %48 : vector<32x128xi1>, vector<32x128xf32>
    %50 = arith.truncf %44 : vector<32x128xf32> to vector<32x128xbf16>
    %c0_24 = arith.constant 0 : index
    %c0_25 = arith.constant 0 : index
    %c0_26 = arith.constant 0 : index
    %51 = vector.load %arg3[%c0_24, %c0_25, %c0_26] : memref<3x128x128xbf16, #tpu.memory_space<vmem>>, vector<1x128x128xbf16>
    %52 = vector.shape_cast %51 : vector<1x128x128xbf16> to vector<128x128xbf16>
    %cst_27 = arith.constant dense<0.000000e+00> : vector<32x128xf32>
    %53 = tpu.matmul %50, %52, %cst_27 {dimension_numbers = #tpu.dot_dimension_numbers<[1], [0], [0], [1], [0, 0, 1, 1], [], []>} : vector<32x128xbf16>, vector<128x128xbf16>, vector<32x128xf32> -> vector<32x128xf32>
    %54 = arith.truncf %39 : vector<32x128xf32> to vector<32x128xbf16>
    %c1_28 = arith.constant 1 : index
    %c0_29 = arith.constant 0 : index
    %c0_30 = arith.constant 0 : index
    %55 = vector.load %arg3[%c1_28, %c0_29, %c0_30] : memref<3x128x128xbf16, #tpu.memory_space<vmem>>, vector<1x128x128xbf16>
    %56 = vector.shape_cast %55 : vector<1x128x128xbf16> to vector<128x128xbf16>
    %cst_31 = arith.constant dense<0.000000e+00> : vector<32x128xf32>
    %57 = tpu.matmul %54, %56, %cst_31 {dimension_numbers = #tpu.dot_dimension_numbers<[1], [0], [0], [1], [0, 0, 1, 1], [], []>} : vector<32x128xbf16>, vector<128x128xbf16>, vector<32x128xf32> -> vector<32x128xf32>
    %58 = arith.addf %53, %57 : vector<32x128xf32>
    %59 = arith.truncf %49 : vector<32x128xf32> to vector<32x128xbf16>
    %c2_32 = arith.constant 2 : index
    %c0_33 = arith.constant 0 : index
    %c0_34 = arith.constant 0 : index
    %60 = vector.load %arg3[%c2_32, %c0_33, %c0_34] : memref<3x128x128xbf16, #tpu.memory_space<vmem>>, vector<1x128x128xbf16>
    %61 = vector.shape_cast %60 : vector<1x128x128xbf16> to vector<128x128xbf16>
    %cst_35 = arith.constant dense<0.000000e+00> : vector<32x128xf32>
    %62 = tpu.matmul %59, %61, %cst_35 {dimension_numbers = #tpu.dot_dimension_numbers<[1], [0], [0], [1], [0, 0, 1, 1], [], []>} : vector<32x128xbf16>, vector<128x128xbf16>, vector<32x128xf32> -> vector<32x128xf32>
    %63 = arith.addf %58, %62 : vector<32x128xf32>
    %64 = arith.addf %63, %1 : vector<32x128xf32>
    %65 = vector.broadcast %10 : vector<1x128xf32> to vector<32x128xf32>
    %66 = arith.cmpf oge, %64, %65 : vector<32x128xf32>
    %cst_36 = arith.constant 1.000000e+00 : f32
    %cst_37 = arith.constant 0.000000e+00 : f32
    %67 = vector.broadcast %cst_36 : f32 to vector<32x128xf32>
    %68 = vector.broadcast %cst_37 : f32 to vector<32x128xf32>
    %69 = arith.select %66, %67, %68 : vector<32x128xi1>, vector<32x128xf32>
    %70 = vector.shape_cast %69 : vector<32x128xf32> to vector<2x16x128xf32>
    %71 = arith.truncf %70 : vector<2x16x128xf32> to vector<2x16x128xbf16>
    %c0_38 = arith.constant 0 : index
    %c0_39 = arith.constant 0 : index
    %c0_40 = arith.constant 0 : index
    %72 = vector.load %arg5[%c0_38, %c0_39, %c0_40] : memref<2x16x128xbf16, #tpu.memory_space<vmem>>, vector<2x16x128xbf16>
    tpu.vector_store %arg5[%c0_38, %c0_39, %c0_40], %71 {strides = array<i32>} : memref<2x16x128xbf16, #tpu.memory_space<vmem>>, vector<2x16x128xbf16>,
    return
  }
  func.func @transform_0(%arg0: i32) -> (i32, i32, i32) {
    %c0_i32 = arith.constant 0 : i32
    %c0_i32_0 = arith.constant 0 : i32
    %c0_i32_1 = arith.constant 0 : i32
    return %arg0, %c0_i32, %c0_i32_0 : i32, i32, i32
  }
  func.func @transform_1(%arg0: i32) -> (i32, i32, i32) {
    %c0_i32 = arith.constant 0 : i32
    %c0_i32_0 = arith.constant 0 : i32
    %c0_i32_1 = arith.constant 0 : i32
    %c0_i32_2 = arith.constant 0 : i32
    return %c0_i32, %c0_i32_0, %c0_i32_1 : i32, i32, i32
  }
  func.func @transform_2(%arg0: i32) -> (i32, i32, i32) {
    %c0_i32 = arith.constant 0 : i32
    %c0_i32_0 = arith.constant 0 : i32
    %c0_i32_1 = arith.constant 0 : i32
    %c0_i32_2 = arith.constant 0 : i32
    return %c0_i32, %c0_i32_0, %c0_i32_1 : i32, i32, i32
  }
  func.func @transform_3(%arg0: i32) -> (i32, i32) {
    %c0_i32 = arith.constant 0 : i32
    %c0_i32_0 = arith.constant 0 : i32
    %c0_i32_1 = arith.constant 0 : i32
    return %c0_i32, %c0_i32_0 : i32, i32
  }
  func.func @transform_4(%arg0: i32) -> (i32, i32, i32) {
    %c0_i32 = arith.constant 0 : i32
    %c0_i32_0 = arith.constant 0 : i32
    %c0_i32_1 = arith.constant 0 : i32
    return %arg0, %c0_i32, %c0_i32_0 : i32, i32, i32
  }
}

</mosaic_0001>

<bundles_post_ra>
// kernel: tpu_custom_call.1
= control target key start
LH: loop header
LB: loop body
LE: loop exit
PB: predicated region body
PF: predicated region fallthrough
CT: control target
= control target key end

     0   :  { %9 = vsyncpa [#allocation3], 0  ;;  %s1582_s0 = inlined_call_operand.hbm [shape: f32[2,16,128], index: 0, kind: input, shape index: {}]   ;;  %s1583_s1 = inlined_call_operand.hbm [shape: bf16[3,128,128], index: 1, kind: input, shape index: {}]   ;;  %s1584_s2 = inlined_call_operand.hbm [shape: bf16[3,128,128], index: 2, kind: input, shape index: {}]   ;;  %s1585_s3 = inlined_call_operand.vmem [shape: f32[2,128], index: 3, kind: input, shape index: {}]   ;;  %s1586_s4 = inlined_call_operand.hbm [shape: bf16[2,16,128], index: 4, kind: output, shape index: {}]  }
   0x1   :  { %10 = vsyncpa [#allocation6], 0 }
   0x2   :  { %11 = vsyncpa [#allocation4], 0  ;;  %s1359_s15 = smov [#allocation5]   ;;  %s1265_s19 = scalar_lea.hbm %s1583_s1, 3072 }
   0x3   :  { %s29_s16 = sshll.u32 %s1359_s15, 4  ;;  %p1266_p0 = scmp.ne.s32.totalorder %s1583_s1, %s1265_s19  ;;  %s30_s16 = int_to_ptr.vmem [resolvable:$true] %s29_s16 }
   0x4   :  { %p1269_p1 = scmp.lt.u32.totalorder %s1265_s19, %s1583_s1 }
   0x6   :  { %p1271_p2 = pnand %p1269_p1, %p1266_p0 }
   0x8   :  { %1274 = shalt.err (!%p1271_p2)
}
   0x9   :  { %s1275_s24 = scalar_lea.vmem %s30_s16, 3072  ;;  %p1280_p4 = scmp.lt.s32.totalorder %s30_s16, %s30_s16 }
   0xa   :  { %p1276_p3 = scmp.ne.s32.totalorder %s30_s16, %s1275_s24  ;;  %p1281_p5 = scmp.lt.s32.totalorder %s1275_s24, %s1275_s24 }
   0xc   :  { %p1282_p6 = por %p1281_p5, %p1280_p4 }
   0xe   :  { %p1283_p7 = pnand %p1282_p6, %p1276_p3 }
  0x10   :  { %1286 = shalt.err (!%p1283_p7)
}
  0x11   :  { %s1360_s25 = smov 64   ;;  %s1361_s26 = smov 4  }
  0x12   :  { %35 = dma.hbm_to_vmem [thread:$0]  %s1583_s1, 3072, %s30_s16, [#allocation6], %s1360_s25, %s1360_s25, %s1361_s26  }
  0x13   :  { %s1362_s29 = smov [#allocation2]   ;;  %s1287_s7 = scalar_lea.hbm %s1582_s0, 512 }
  0x14   :  { %s17_s30 = sshll.u32 %s1362_s29, 4  ;;  %p1288_p8 = scmp.ne.s32.totalorder %s1582_s0, %s1287_s7  ;;  %s18_s30 = int_to_ptr.vmem [resolvable:$true] %s17_s30 }
  0x15   :  { %p1291_p9 = scmp.lt.u32.totalorder %s1287_s7, %s1582_s0 }
  0x17   :  { %p1293_p10 = pnand %p1291_p9, %p1288_p8 }
  0x19   :  { %1296 = shalt.err (!%p1293_p10)
}
  0x1a   :  { %s1297_s12 = scalar_lea.vmem %s18_s30, 512  ;;  %p1302_p12 = scmp.lt.s32.totalorder %s18_s30, %s18_s30 }
  0x1b   :  { %p1298_p11 = scmp.ne.s32.totalorder %s18_s30, %s1297_s12  ;;  %p1303_p13 = scmp.lt.s32.totalorder %s1297_s12, %s1297_s12 }
  0x1d   :  { %p1304_p0 = por %p1303_p13, %p1302_p12 }
  0x1f   :  { %p1305_p1 = pnand %p1304_p0, %p1298_p11 }
  0x21   :  { %1308 = shalt.err (!%p1305_p1)
}
  0x22   :  { %s1363_s1 = smov 128   ;;  %s1364_s13 = smov 8  }
  0x23   :  { %23 = dma.hbm_to_vmem [thread:$0]  %s1582_s0, 512, %s18_s30, [#allocation3], %s1363_s1, %s1363_s1, %s1364_s13  }
  0x24   :  { %s1365_s16 = smov [#allocation7]   ;;  %s1309_s20 = scalar_lea.hbm %s1584_s2, 3072 }
  0x25   :  { %s41_s17 = sshll.u32 %s1365_s16, 4  ;;  %p1310_p2 = scmp.ne.s32.totalorder %s1584_s2, %s1309_s20  ;;  %s42_s17 = int_to_ptr.vmem [resolvable:$true] %s41_s17 }
  0x26   :  { %p1313_p3 = scmp.lt.u32.totalorder %s1309_s20, %s1584_s2 }
  0x28   :  { %p1315_p4 = pnand %p1313_p3, %p1310_p2 }
  0x2a   :  { %1318 = shalt.err (!%p1315_p4)
}
  0x2b   :  { %s1319_s27 = scalar_lea.vmem %s42_s17, 3072  ;;  %p1324_p6 = scmp.lt.s32.totalorder %s42_s17, %s42_s17 }
  0x2c   :  { %p1320_p5 = scmp.ne.s32.totalorder %s42_s17, %s1319_s27  ;;  %p1325_p7 = scmp.lt.s32.totalorder %s1319_s27, %s1319_s27 }
  0x2e   :  { %p1326_p8 = por %p1325_p7, %p1324_p6 }
  0x30   :  { %p1327_p9 = pnand %p1326_p8, %p1320_p5 }
  0x32   :  { %1330 = shalt.err (!%p1327_p9)
}
  0x33   :  { %47 = dma.hbm_to_vmem [thread:$0]  %s1584_s2, 3072, %s42_s17, [#allocation6], %s1360_s25, %s1360_s25, %s1361_s26  }
  0x34   :  { %1353 = dma.done.wait [#allocation3], 512  }
  0x35   :  { %1354 = vsyncadd [#allocation3], 4294966784 }
  0x36   :  { %1355 = dma.done.wait [#allocation6], 6144  }
  0x37   :  { %1356 = vsyncadd [#allocation6], 4294961152  ;;  %v1217_v0 = vld [vmem:[#allocation5 + $0x40] sm:$0xff]   ;;  %v1218_v1 = vld [vmem:[#allocation5 + $0x48] sm:$0xff]   ;;  %v64_v8 = vlaneseq  ;;  %vm1366_vm2 = vmmov 1   ;;  %s1369_s6 = smov [#allocation8]  }
  0x38   :  { %1070 = vmatprep.subr.bf16.mxu0 %v1217_v0  ;;  %v1219_v2 = vld [vmem:[#allocation5 + $0x50] sm:$0xff]   ;;  %v1220_v3 = vld [vmem:[#allocation5 + $0x58] sm:$0xff]   ;;  %v1437_v4 = vld [vmem:[#allocation2] sm:$0xff]  ;;  %s904_s7 = sshll.u32 %s1369_s6, 4  ;;  %s905_s7 = int_to_ptr.vmem [resolvable:$true] %s904_s7 }
  0x39   :  { %1071 = vmatpush3.bf16.msra.mxu0 %v1217_v0  ;;  %v1439_v5 = vld [vmem:[#allocation2 + $0x8] sm:$0xff]  ;;  %v1221_v7 = vld [vmem:[#allocation5 + $0x60] sm:$0xff]   ;;  %v1443_v10 = vshrl.u32 %v64_v8, 7  ;;  %v1223_v11 = vld [vmem:[#allocation5 + $0x70] sm:$0xff]   ;;  %v83_v14 = vrot.slane %v1437_v4, 7  ;;  %v104_v41 = vrot.slane %v1437_v4, 1  ;;  %p1336_p11 = scmp.lt.s32.totalorder %s905_s7, %s905_s7 }
  0x3a   :  { %1072 = vmatprep.subr.bf16.mxu0 %v1218_v1  ;;  %v143_v6 = vpack.c.bf16 %v1439_v5, %v1437_v4  ;;  %v1222_v9 = vld [vmem:[#allocation5 + $0x68] sm:$0xff]   ;;  %v1224_v12 = vld [vmem:[#allocation5 + $0x78] sm:$0xff]   ;;  %v84_v16 = vrot.slane %v1439_v5, 7  ;;  %v1225_v18 = vld [vmem:[#allocation5] sm:$0xff]   ;;  %v105_v42 = vrot.slane %v1439_v5, 1 }
  0x3b   :  { %v69_v13 = vand.u32 15, %v1443_v10  ;;  %v1447_v15 = vld [vmem:[#allocation2 + $0x18] sm:$0xff]  ;;  %vm87_vm0 = vcmp.lt.s32.totalorder %v1443_v10, 1  ;;  %v1452_v19 = vld [vmem:[#allocation2 + $0x10] sm:$0xff]  ;;  %v1241_v22 = vld [vmem:[#allocation7 + $0x40] sm:$0xff]   ;;  %v67_v38 = vadd.s32 16, %v1443_v10 }
  0x3c   :  { %1086 = vmatprep.mubr.bf16.mxu0 %v143_v6  ;;  %v86_v17 = vrot.slane %v1447_v15, 7  ;;  %v90_v20 = vsel %vm87_vm0, %v83_v14, %v84_v16  ;;  %v1242_v23 = vld [vmem:[#allocation7 + $0x48] sm:$0xff]   ;;  %v144_v24 = vpack.c.bf16 %v1447_v15, %v1452_v19  ;;  %1130 = vmatprep.subr.bf16.mxu1 %v1241_v22  ;;  %v1243_v28 = vld [vmem:[#allocation7 + $0x50] sm:$0xff]   ;;  %v1244_v30 = vld [vmem:[#allocation7 + $0x58] sm:$0xff]   ;;  %v66_v39 = vadd.s32 8, %v1443_v10 }
  0x3d   :  { %1073 = vmatpush3.bf16.msra.mxu0 %v1218_v1  ;;  %vm73_vm1 = vcmp.ne.s32.totalorder %v69_v13, 0  ;;  %1131 = vmatpush3.bf16.msra.mxu1 %v1241_v22  ;;  %v1226_v27 = vld [vmem:[#allocation5 + $0x8] sm:$0xff]   ;;  %v1227_v29 = vld [vmem:[#allocation5 + $0x10] sm:$0xff]   ;;  %v1228_v31 = vld [vmem:[#allocation5 + $0x18] sm:$0xff]   ;;  %v85_v40 = vrot.slane %v1452_v19, 7  ;;  %v106_v43 = vrot.slane %v1452_v19, 1 }
  0x3e   :  { %1074 = vmatprep.subr.bf16.mxu0 %v1219_v2  ;;  %v91_v21 = vsel %vm87_vm0, %v86_v17, %v83_v14  ;;  %vm1465_vm3 = vmpackc.low %vm1366_vm2, %vm73_vm1  ;;  %1132 = vmatprep.subr.bf16.mxu1 %v1242_v23  ;;  %v1245_v32 = vld [vmem:[#allocation7 + $0x60] sm:$0xff]   ;;  %v1246_v34 = vld [vmem:[#allocation7 + $0x68] sm:$0xff]   ;;  %v71_v45 = vand.u32 15, %v67_v38  ;;  %v70_v46 = vand.u32 15, %v66_v39  ;;  %vm108_vm4 = vcmp.lt.s32.totalorder %v1443_v10, 7 }
  0x3f   :  { %v934_v26 = vpack.c.bf16 %v90_v20, %v91_v21  ;;  %v1229_v33 = vld [vmem:[#allocation5 + $0x20] sm:$0xff]   ;;  %v1230_v35 = vld [vmem:[#allocation5 + $0x28] sm:$0xff]   ;;  %v1247_v36 = vld [vmem:[#allocation7 + $0x70] sm:$0xff]   ;;  %v88_v47 = vsel %vm87_vm0, %v85_v40, %v86_v17  ;;  %v89_v48 = vsel %vm87_vm0, %v84_v16, %v85_v40  ;;  %v110_v50 = vsel %vm108_vm4, %v105_v42, %v106_v43 }
  0x40   :  { %v1231_v37 = vld [vmem:[#allocation5 + $0x30] sm:$0xff]   ;;  %v1232_v44 = vld [vmem:[#allocation5 + $0x38] sm:$0xff]   ;;  %v1233_v49 = vld [vmem:[#allocation5 + $0x80] sm:$0xff]   ;;  %vm75_vm5 = vcmp.ne.s32.totalorder %v71_v45, 0  ;;  %v111_v51 = vsel %vm108_vm4, %v104_v41, %v105_v42  ;;  %vm78_vm6 = vcmp.ne.s32.totalorder %v70_v46, 15  ;;  %v937_v52 = vpack.c.bf16 %v88_v47, %v89_v48 }
  0x41   :  { %1075 = vmatpush3.bf16.msra.mxu0 %v1219_v2  ;;  %1133 = vmatpush3.bf16.msra.mxu1 %v1242_v23  ;;  %vm1491_vm7 = vmpackc.low %vm1366_vm2, %vm75_vm5  ;;  %v948_v54 = vpack.c.bf16 %v110_v50, %v111_v51  ;;  %v1234_v55 = vld [vmem:[#allocation5 + $0x88] sm:$0xff]   ;;  %v1235_v57 = vld [vmem:[#allocation5 + $0x90] sm:$0xff]   ;;  %v68_v62 = vadd.s32 24, %v1443_v10  ;;  %v107_v63 = vrot.slane %v1447_v15, 1  ;;  %v1367_v14 = vmov 0.0  }
  0x42   :  { %1076 = vmatprep.subr.bf16.mxu0 %v1220_v3  ;;  %1134 = vmatprep.subr.bf16.mxu1 %v1243_v28  ;;  %vm1496_vm8 = vmpackc.low %vm78_vm6, %vm1366_vm2  ;;  %v1236_v58 = vld [vmem:[#allocation5 + $0x98] sm:$0xff]   ;;  %v1237_v59 = vld [vmem:[#allocation5 + $0xa0] sm:$0xff]  }
  0x43   :  { %v1238_v60 = vld [vmem:[#allocation5 + $0xa8] sm:$0xff]   ;;  %v1239_v61 = vld [vmem:[#allocation5 + $0xb0] sm:$0xff]   ;;  %v1240_v0 = vld [vmem:[#allocation5 + $0xb8] sm:$0xff]   ;;  %v72_v1 = vand.u32 15, %v68_v62  ;;  %v109_v2 = vsel %vm108_vm4, %v106_v43, %v107_v63 }
  0x44   :  { %v1248_v8 = vld [vmem:[#allocation7 + $0x78] sm:$0xff]   ;;  %v1251_v46 = vld [vmem:[#allocation7 + $0x10] sm:$0xff]   ;;  %v1254_v50 = vld [vmem:[#allocation7 + $0x28] sm:$0xff]  }
  0x45   :  { %1077 = vmatpush3.bf16.msra.mxu0 %v1220_v3  ;;  %1135 = vmatpush3.bf16.msra.mxu1 %v1243_v28  ;;  %v112_v3 = vsel %vm108_vm4, %v107_v63, %v104_v41  ;;  %vm80_vm9 = vcmp.ne.s32.totalorder %v72_v1, 15  ;;  %v1252_v48 = vld [vmem:[#allocation7 + $0x18] sm:$0xff]   ;;  %v1255_v10 = vld [vmem:[#allocation7 + $0x30] sm:$0xff]   ;;  %v1258_v25 = vld [vmem:[#allocation7 + $0x88] sm:$0xff]  }
  0x46   :  { %1078 = vmatprep.subr.bf16.mxu0 %v1221_v7  ;;  %1136 = vmatprep.subr.bf16.mxu1 %v1244_v30  ;;  %v951_v6 = vpack.c.bf16 %v112_v3, %v109_v2  ;;  %vm1511_vm10 = vmpackc.low %vm80_vm9, %vm1366_vm2  ;;  %v1256_v51 = vld [vmem:[#allocation7 + $0x38] sm:$0xff]   ;;  %v994_v56 = vld [vmem:[%s1585_s3 + $0x1] ss:$0 sm:$0xff] }
  0x47   :  { %v1264_v53 = vld [vmem:[#allocation7 + $0xb8] sm:$0xff]  }
  0x49   :  { %1079 = vmatpush3.bf16.msra.mxu0 %v1221_v7  ;;  %1137 = vmatpush3.bf16.msra.mxu1 %v1244_v30 }
  0x4a   :  { %1080 = vmatprep.subr.bf16.mxu0 %v1222_v9  ;;  %1138 = vmatprep.subr.bf16.mxu1 %v1245_v32 }
  0x4d   :  { %1081 = vmatpush3.bf16.msra.mxu0 %v1222_v9  ;;  %1139 = vmatpush3.bf16.msra.mxu1 %v1245_v32  ;;  %v1249_v9 = vld [vmem:[#allocation7] sm:$0xff]  }
  0x4e   :  { %1082 = vmatprep.subr.bf16.mxu0 %v1223_v11  ;;  %1140 = vmatprep.subr.bf16.mxu1 %v1246_v34 }
  0x51   :  { %1083 = vmatpush3.bf16.msra.mxu0 %v1223_v11  ;;  %1141 = vmatpush3.bf16.msra.mxu1 %v1246_v34  ;;  %v953_v11 = vld [vmem:[%s1585_s3] ss:$0 sm:$0xff]  ;;  %v1368_v34 = vmov 1.0|1.0   ;;  %s1331_s3 = scalar_lea.vmem %s905_s7, 256 }
  0x52   :  { %1084 = vmatprep.subr.bf16.mxu0 %v1224_v12  ;;  %1142 = vmatprep.subr.bf16.mxu1 %v1247_v36  ;;  %p1332_p10 = scmp.ne.s32.totalorder %s905_s7, %s1331_s3  ;;  %p1337_p12 = scmp.lt.s32.totalorder %s1331_s3, %s1331_s3 }
  0x54   :  { %p1338_p13 = por %p1337_p12, %p1336_p11 }
  0x55   :  { %1085 = vmatpush3.bf16.msra.mxu0 %v1224_v12  ;;  %1143 = vmatpush3.bf16.msra.mxu1 %v1247_v36 }
  0x56   :  { %1090 = vmatprep.subr.bf16.mxu0 %v1225_v18  ;;  %1144 = vmatprep.subr.bf16.mxu1 %v1248_v8  ;;  %p1339_p0 = pnand %p1338_p13, %p1332_p10 }
  0x58   :  { %1087 = vmatmul.mubr.bf16.vlgmr.msra.gmra.mrb[0].mxu0 %v144_v24 }
  0x59   :  { %1091 = vmatpush3.bf16.msra.mxu0 %v1225_v18  ;;  %1106 = vmatprep.mubr.msk.bf16.mxu0 %vm1465_vm3, %v934_v26 }
  0x5a   :  { %1092 = vmatprep.subr.bf16.mxu0 %v1226_v27  ;;  %1145 = vmatpush3.bf16.msra.mxu1 %v1248_v8 }
  0x5b   :  { %1150 = vmatprep.subr.bf16.mxu1 %v1249_v9 }
  0x5d   :  { %1093 = vmatpush3.bf16.msra.mxu0 %v1226_v27 }
  0x5e   :  { %1094 = vmatprep.subr.bf16.mxu0 %v1227_v29 }
  0x61   :  { %1095 = vmatpush3.bf16.msra.mxu0 %v1227_v29 }
  0x62   :  { %1096 = vmatprep.subr.bf16.mxu0 %v1228_v31 }
  0x65   :  { %1097 = vmatpush3.bf16.msra.mxu0 %v1228_v31  ;;  %v1250_v31 = vld [vmem:[#allocation7 + $0x8] sm:$0xff]  }
  0x66   :  { %1098 = vmatprep.subr.bf16.mxu0 %v1229_v33 }
  0x69   :  { %1099 = vmatpush3.bf16.msra.mxu0 %v1229_v33 }
  0x6a   :  { %1100 = vmatprep.subr.bf16.mxu0 %v1230_v35 }
  0x6d   :  { %1101 = vmatpush3.bf16.msra.mxu0 %v1230_v35 }
  0x6e   :  { %1102 = vmatprep.subr.bf16.mxu0 %v1231_v37 }
  0x71   :  { %1103 = vmatpush3.bf16.msra.mxu0 %v1231_v37 }
  0x72   :  { %1104 = vmatprep.subr.bf16.mxu0 %v1232_v44 }
  0x75   :  { %1105 = vmatpush3.bf16.msra.mxu0 %v1232_v44 }
  0x76   :  { %1110 = vmatprep.subr.bf16.mxu0 %v1233_v49 }
  0x78   :  { %1107 = vmatmul.mubr.msk.bf16.vlgmr.msra.gmra.mrb[0].mxu0 %vm1491_vm7, %v937_v52  ;;  %v1257_v52 = vld [vmem:[#allocation7 + $0x80] sm:$0xff]  }
  0x79   :  { %1111 = vmatpush3.bf16.msra.mxu0 %v1233_v49  ;;  %1126 = vmatprep.mubr.msk.bf16.mxu0 %vm1496_vm8, %v948_v54  ;;  %v1253_v49 = vld [vmem:[#allocation7 + $0x20] sm:$0xff]   ;;  %v1259_v54 = vld [vmem:[#allocation7 + $0x90] sm:$0xff]  }
  0x7a   :  { %1112 = vmatprep.subr.bf16.mxu0 %v1234_v55 }
  0x7d   :  { %1113 = vmatpush3.bf16.msra.mxu0 %v1234_v55  ;;  %v1260_v55 = vld [vmem:[#allocation7 + $0x98] sm:$0xff]  }
  0x7e   :  { %1114 = vmatprep.subr.bf16.mxu0 %v1235_v57 }
  0x81   :  { %1115 = vmatpush3.bf16.msra.mxu0 %v1235_v57  ;;  %v1261_v57 = vld [vmem:[#allocation7 + $0xa0] sm:$0xff]  }
  0x82   :  { %1116 = vmatprep.subr.bf16.mxu0 %v1236_v58 }
  0x85   :  { %1117 = vmatpush3.bf16.msra.mxu0 %v1236_v58  ;;  %v1262_v58 = vld [vmem:[#allocation7 + $0xa8] sm:$0xff]  }
  0x86   :  { %1118 = vmatprep.subr.bf16.mxu0 %v1237_v59 }
  0x89   :  { %1119 = vmatpush3.bf16.msra.mxu0 %v1237_v59  ;;  %v1263_v59 = vld [vmem:[#allocation7 + $0xb0] sm:$0xff]  }
  0x8a   :  { %1120 = vmatprep.subr.bf16.mxu0 %v1238_v60 }
  0x8d   :  { %1121 = vmatpush3.bf16.msra.mxu0 %v1238_v60 }
  0x8e   :  { %1122 = vmatprep.subr.bf16.mxu0 %v1239_v61 }
  0x91   :  { %1123 = vmatpush3.bf16.msra.mxu0 %v1239_v61 }
  0x92   :  { %1124 = vmatprep.subr.bf16.mxu0 %v1240_v0 }
  0x95   :  { %1125 = vmatpush3.bf16.msra.mxu0 %v1240_v0 }
  0x98   :  { %1127 = vmatmul.mubr.msk.bf16.vlgmr.msra.gmra.mrb[0].mxu0 %vm1511_vm10, %v951_v6 }
 0x16b   :  { %v1128_v12 = vpop.f32.mrb[0].mxu0 }
 0x16c   :  { %vm482_vm11 = vcmp.ge.f32.partialorder %v1128_v12, %v953_v11  ;;  %v457_v13 = vpop.f32.mrb[1].mxu0 }
 0x16d   :  { %v486_v16 = vsel %vm482_vm11, 1.0, %v1367_v14  ;;  %vm480_vm12 = vcmp.ge.f32.partialorder %v457_v13, %v953_v11  ;;  %v1129_v17 = vpop.f32.mrb[2].mxu0 }
 0x16e   :  { %v490_v18 = vrot.slane %v486_v16, 7  ;;  %v484_v20 = vsel %vm480_vm12, 1.0, %v1367_v14  ;;  %vm483_vm13 = vcmp.ge.f32.partialorder %v1129_v17, %v953_v11  ;;  %v460_v21 = vpop.f32.mrb[3].mxu0  ;;  %v502_v27 = vrot.slane %v486_v16, 1 }
 0x16f   :  { %v488_v22 = vrot.slane %v484_v20, 7  ;;  %v500_v23 = vrot.slane %v484_v20, 1  ;;  %v487_v24 = vsel %vm483_vm13, 1.0, %v1367_v14  ;;  %vm1524_vm14 = vmpackc.low %vm483_vm13, %vm482_vm11  ;;  %vm481_vm15 = vcmp.ge.f32.partialorder %v460_v21, %v953_v11 }
 0x170   :  { %v491_v28 = vrot.slane %v487_v24, 7  ;;  %v503_v29 = vrot.slane %v487_v24, 1  ;;  %v485_v30 = vsel %vm481_vm15, 1.0, %v1367_v14  ;;  %vm962_vm1 = vmpackc.low %vm481_vm15, %vm480_vm12 }
 0x171   :  { %v489_v32 = vrot.slane %v485_v30, 7  ;;  %v501_v33 = vrot.slane %v485_v30, 1  ;;  %1146 = vmatprep.mubr.msk.bf16.mxu1 %vm962_vm1, %v1368_v34 }
 0x172   :  { %v492_v35 = vsel %vm87_vm0, %v490_v18, %v491_v28  ;;  %v495_v36 = vsel %vm87_vm0, %v491_v28, %v488_v22  ;;  %v504_v37 = vsel %vm108_vm4, %v502_v27, %v503_v29  ;;  %v507_v38 = vsel %vm108_vm4, %v503_v29, %v500_v23  ;;  %1147 = vmatmul.mubr.msk.bf16.vlgmr.msra.gmra.mrb[0].mxu1 %vm1524_vm14, %v1368_v34 }
 0x173   :  { %v992_v39 = vpack.c.bf16 %v507_v38, %v504_v37  ;;  %v493_v40 = vsel %vm87_vm0, %v489_v32, %v490_v18  ;;  %v494_v41 = vsel %vm87_vm0, %v488_v22, %v489_v32  ;;  %v505_v42 = vsel %vm108_vm4, %v501_v33, %v502_v27  ;;  %1151 = vmatpush3.bf16.msra.mxu1 %v1249_v9 }
 0x174   :  { %v506_v43 = vsel %vm108_vm4, %v500_v23, %v501_v33  ;;  %v978_v44 = vpack.c.bf16 %v492_v35, %v493_v40  ;;  %1152 = vmatprep.subr.bf16.mxu1 %v1250_v31  ;;  %v975_v45 = vpack.c.bf16 %v494_v41, %v495_v36 }
 0x175   :  { %v989_v47 = vpack.c.bf16 %v505_v42, %v506_v43 }
 0x176   :  { %1166 = vmatprep.mubr.msk.bf16.mxu1 %vm1465_vm3, %v975_v45 }
 0x177   :  { %1153 = vmatpush3.bf16.msra.mxu1 %v1250_v31 }
 0x178   :  { %1154 = vmatprep.subr.bf16.mxu1 %v1251_v46 }
 0x17b   :  { %1155 = vmatpush3.bf16.msra.mxu1 %v1251_v46 }
 0x17c   :  { %1156 = vmatprep.subr.bf16.mxu1 %v1252_v48 }
 0x17f   :  { %1157 = vmatpush3.bf16.msra.mxu1 %v1252_v48 }
 0x180   :  { %1158 = vmatprep.subr.bf16.mxu1 %v1253_v49 }
 0x183   :  { %1159 = vmatpush3.bf16.msra.mxu1 %v1253_v49 }
 0x184   :  { %1160 = vmatprep.subr.bf16.mxu1 %v1254_v50 }
 0x187   :  { %1161 = vmatpush3.bf16.msra.mxu1 %v1254_v50 }
 0x188   :  { %1162 = vmatprep.subr.bf16.mxu1 %v1255_v10 }
 0x18b   :  { %1163 = vmatpush3.bf16.msra.mxu1 %v1255_v10 }
 0x18c   :  { %1164 = vmatprep.subr.bf16.mxu1 %v1256_v51 }
 0x18f   :  { %1165 = vmatpush3.bf16.msra.mxu1 %v1256_v51 }
 0x190   :  { %1170 = vmatprep.subr.bf16.mxu1 %v1257_v52 }
 0x192   :  { %1167 = vmatmul.mubr.msk.bf16.vlgmr.msra.gmra.mrb[0].mxu1 %vm1491_vm7, %v978_v44 }
 0x193   :  { %1171 = vmatpush3.bf16.msra.mxu1 %v1257_v52  ;;  %1186 = vmatprep.mubr.msk.bf16.mxu1 %vm1496_vm8, %v989_v47 }
 0x194   :  { %1172 = vmatprep.subr.bf16.mxu1 %v1258_v25 }
 0x197   :  { %1173 = vmatpush3.bf16.msra.mxu1 %v1258_v25 }
 0x198   :  { %1174 = vmatprep.subr.bf16.mxu1 %v1259_v54 }
 0x19b   :  { %1175 = vmatpush3.bf16.msra.mxu1 %v1259_v54 }
 0x19c   :  { %1176 = vmatprep.subr.bf16.mxu1 %v1260_v55 }
 0x19f   :  { %1177 = vmatpush3.bf16.msra.mxu1 %v1260_v55 }
 0x1a0   :  { %1178 = vmatprep.subr.bf16.mxu1 %v1261_v57 }
 0x1a3   :  { %1179 = vmatpush3.bf16.msra.mxu1 %v1261_v57 }
 0x1a4   :  { %1180 = vmatprep.subr.bf16.mxu1 %v1262_v58 }
 0x1a7   :  { %1181 = vmatpush3.bf16.msra.mxu1 %v1262_v58 }
 0x1a8   :  { %1182 = vmatprep.subr.bf16.mxu1 %v1263_v59 }
 0x1ab   :  { %1183 = vmatpush3.bf16.msra.mxu1 %v1263_v59 }
 0x1ac   :  { %1184 = vmatprep.subr.bf16.mxu1 %v1264_v53 }
 0x1af   :  { %1185 = vmatpush3.bf16.msra.mxu1 %v1264_v53 }
 0x1b2   :  { %1187 = vmatmul.mubr.msk.bf16.vlgmr.msra.gmra.mrb[0].mxu1 %vm1511_vm10, %v992_v39 }
 0x285   :  { %v1188_v60 = vpop.f32.mrb[0].mxu1 }
 0x286   :  { %v865_v61 = vadd.f32 %v1188_v60, %v1452_v19  ;;  %v844_v62 = vpop.f32.mrb[1].mxu1 }
 0x287   :  { %v863_v63 = vadd.f32 %v844_v62, %v1437_v4  ;;  %v1189_v0 = vpop.f32.mrb[2].mxu1 }
 0x288   :  { %vm873_vm0 = vcmp.ge.f32.partialorder %v865_v61, %v994_v56  ;;  %v866_v1 = vadd.f32 %v1189_v0, %v1447_v15  ;;  %v847_v2 = vpop.f32.mrb[3].mxu1 }
 0x289   :  { %vm871_vm2 = vcmp.ge.f32.partialorder %v863_v63, %v994_v56  ;;  %v864_v3 = vadd.f32 %v847_v2, %v1439_v5  ;;  %v877_v6 = vsel %vm873_vm0, 1.0, %v1367_v14 }
 0x28a   :  { %vm874_vm3 = vcmp.ge.f32.partialorder %v866_v1, %v994_v56  ;;  %v875_v19 = vsel %vm871_vm2, 1.0, %v1367_v14 }
 0x28b   :  { %v878_v7 = vsel %vm874_vm3, 1.0, %v1367_v14  ;;  %vm872_vm4 = vcmp.ge.f32.partialorder %v864_v3, %v994_v56 }
 0x28c   :  { %v1007_v8 = vpack.c.bf16 %v878_v7, %v877_v6  ;;  %v876_v4 = vsel %vm872_vm4, 1.0, %v1367_v14 }
 0x28d   :  { %v1004_v9 = vpack.c.bf16 %v876_v4, %v875_v19 }
 0x28e   :  { %1009 = vst [vmem:[#allocation8 + $0x8] sm:$0xff] %v1007_v8  }
 0x28f   :  { %1005 = vst [vmem:[#allocation8] sm:$0xff] %v1004_v9  }
 0x290   :  { %1342 = shalt.err (!%p1339_p0)
}
 0x291   :  { %s1343_s10 = scalar_lea.hbm %s1586_s4, 256 }
 0x292   :  { %p1344_p1 = scmp.ne.s32.totalorder %s1586_s4, %s1343_s10  ;;  %p1347_p2 = scmp.lt.u32.totalorder %s1343_s10, %s1586_s4 }
 0x294   :  { %p1349_p3 = pnand %p1347_p2, %p1344_p1 }
 0x296   :  { %1352 = shalt.err (!%p1349_p3)
}
 0x297   :  { %910 = dma.vmem_to_hbm [thread:$0]  %s905_s7, 256, %s1586_s4, [#allocation4], %s1360_s25, %s1360_s25, %s1361_s26  }
 0x298   :  { %1357 = dma.done.wait [#allocation4], 256  }
 0x299   :  { %1358 = vsyncadd [#allocation4], 4294967040 }
 0x29a   :  { %914 = vsyncpa [#allocation3], 1 }
 0x29b   :  { %915 = vsyncpa [#allocation6], 1 }
 0x29c   :  { %916 = vsyncpa [#allocation4], 1 }

</bundles_post_ra>
